<compile_context>
chip_gen: v6e
topology: v6e:2x2x1
jax: 0.10.0
libtpu: 0.0.40
codegen_flags: <defaults>
</compile_context>

<pallas_src>
import functools

import jax
import jax.numpy as jnp
from jax import lax
from jax.experimental import pallas as pl
from jax.experimental.pallas import tpu as pltpu


# -----------------------------------------------------------------------------
# Generation-aware tile selection / VMEM budget
# -----------------------------------------------------------------------------
def _tpu_vmem_caps():
    try:
        cap = int(pltpu.get_tpu_info().vmem_capacity_bytes)
    except Exception:  # non-TPU trace / older jax: fall back to safe defaults
        cap = 128 << 20
    if cap <= (64 << 20):          # v7x-class: 64 MiB VMEM per TensorCore
        return 4096, 48 << 20      # (max rows per grid step, vmem_limit_bytes)
    return 8192, 64 << 20          # v5e / v6e: 128 MiB physical VMEM


_MAX_TILE_N, _VMEM_LIMIT = _tpu_vmem_caps()


def _choose_tile(n, tile_n=None):
    if tile_n is not None:
        return int(tile_n)
    if n <= 1024:
        return n                   # tiny problem: one full-extent block
    # Keep >= 2 grid steps (both v7x TCs busy), otherwise the biggest tile the
    # VMEM budget allows, amortizing the ~0.35us per-grid-step overhead.
    half = (((n + 1) // 2) + 7) // 8 * 8
    return min(_MAX_TILE_N, half)


# -----------------------------------------------------------------------------
# Pallas kernels (concat folded into zero-padded weights; one wide store)
# -----------------------------------------------------------------------------
def _rwse_kernel(x_ref, pe_ref, wx_ref, w_ref, b_ref, out_ref):
    # out = x @ Wx_pad + pe @ W_pad + b_cat   (BatchNorm pre-folded into W_pad/b_cat)
    acc = jnp.dot(x_ref[...].astype(jnp.float32), wx_ref[...],
                  preferred_element_type=jnp.float32)
    acc = acc + jnp.dot(pe_ref[...].astype(jnp.float32), w_ref[...],
                        preferred_element_type=jnp.float32)
    out_ref[...] = (acc + b_ref[...]).astype(out_ref.dtype)


def _lape_kernel(x_ref, pe_ref, wx_ref, w1_ref, b1_ref, w2_ref, b_ref, out_ref):
    # h = ReLU(pe @ W1 + b1); out = x @ Wx_pad + h @ W2_pad + b_cat
    h = jnp.dot(pe_ref[...].astype(jnp.float32), w1_ref[...],
                preferred_element_type=jnp.float32) + b1_ref[...]
    h = jnp.maximum(h, 0.0)
    acc = jnp.dot(x_ref[...].astype(jnp.float32), wx_ref[...],
                  preferred_element_type=jnp.float32)
    acc = acc + jnp.dot(h, w2_ref[...], preferred_element_type=jnp.float32)
    out_ref[...] = (acc + b_ref[...]).astype(out_ref.dtype)


# -----------------------------------------------------------------------------
# BlockSpec helpers
# -----------------------------------------------------------------------------
def _node_spec(tile_n, feat):
    # Row-tiled (tile_n, feat) block, walked along the node axis.
    return pl.BlockSpec((tile_n, feat), lambda i: (i, 0))


def _param_spec(shape):
    # Full-array block with a constant index map: stays resident in VMEM.
    return pl.BlockSpec(shape, lambda i: (0, 0))


def _pad_cols(w, out_feat, col_off):
    # Place w (in_dim, d) into a zero (in_dim, out_feat) at static column offset.
    out = jnp.zeros((w.shape[0], out_feat), jnp.float32)
    return out.at[:, col_off:col_off + w.shape[1]].set(w.astype(jnp.float32))


def _x_weights(x_dim, x_cols, out_feat, wx, bx):
    if wx is not None:
        wx_pad = _pad_cols(wx, out_feat, 0)
        bx_row = bx.reshape(1, -1).astype(jnp.float32)
    else:
        # Identity passthrough for x, expressed as MXU work (exact: one nonzero
        # product per output element), avoiding a lane-axis concatenate.
        wx_pad = _pad_cols(jnp.eye(x_dim, dtype=jnp.float32), out_feat, 0)
        bx_row = jnp.zeros((1, x_cols), jnp.float32)
    return wx_pad, bx_row


# -----------------------------------------------------------------------------
# pallas_call wrappers (jitted: stats fold + weight padding + kernel)
# -----------------------------------------------------------------------------
@functools.partial(jax.jit, static_argnames=("tile_n",))
def lape_forward(x, lape_pe, w1, b1, w2, b2, wx=None, bx=None, tile_n=None):
    n, x_dim = x.shape
    k = lape_pe.shape[1]
    pe_hidden = w1.shape[1]
    x_cols = wx.shape[1] if wx is not None else x_dim
    pe_dim = w2.shape[1]
    out_feat = x_cols + pe_dim

    wx_pad, bx_row = _x_weights(x_dim, x_cols, out_feat, wx, bx)
    w2_pad = _pad_cols(w2, out_feat, x_cols)
    b_cat = jnp.concatenate([bx_row, b2.reshape(1, -1).astype(jnp.float32)], axis=-1)

    tn = _choose_tile(n, tile_n)
    cost = pl.CostEstimate(
        flops=int(2 * n * (k * pe_hidden + x_dim * out_feat + pe_hidden * out_feat)),
        transcendentals=0,
        bytes_accessed=int(4 * n * (x_dim + k + out_feat)))

    return pl.pallas_call(
        _lape_kernel,
        grid=(pl.cdiv(n, tn),),
        out_shape=jax.ShapeDtypeStruct((n, out_feat), x.dtype),
        in_specs=[
            _node_spec(tn, x_dim),
            _node_spec(tn, k),
            _param_spec(wx_pad.shape),
            _param_spec(w1.shape),
            _param_spec(b1.shape),
            _param_spec(w2_pad.shape),
            _param_spec(b_cat.shape),
        ],
        out_specs=_node_spec(tn, out_feat),
        compiler_params=pltpu.CompilerParams(
            dimension_semantics=("parallel",),
            vmem_limit_bytes=_VMEM_LIMIT),
        cost_estimate=cost,
    )(x, lape_pe, wx_pad, w1, b1, w2_pad, b_cat)


@functools.partial(jax.jit, static_argnames=("eps", "tile_n"))
def rwse_forward(x, rw_pe, gamma, beta, w, b, wx=None, bx=None,
                 eps=1e-5, tile_n=None):
    n, x_dim = x.shape
    k = rw_pe.shape[1]
    x_cols = wx.shape[1] if wx is not None else x_dim
    pe_dim = w.shape[1]
    out_feat = x_cols + pe_dim

    # Training-mode BatchNorm1d batch statistics over nodes, computed in ONE
    # pass (sum / sum-of-squares) so rw_pe is read from HBM once, then folded
    # into the linear so the tiled kernel stays a pure row-wise map.
    # TODO(synk): eval-mode running_mean/running_var tracking is not modeled.
    pe32 = rw_pe.astype(jnp.float32)
    s = jnp.sum(pe32, axis=0)
    ssq = jnp.sum(pe32 * pe32, axis=0)
    mean = s / n
    var = jnp.maximum(ssq / n - mean * mean, 0.0)      # biased var, as BN uses
    scale = gamma.reshape(-1) * lax.rsqrt(var + eps)   # (rw_steps,)
    shift = beta.reshape(-1) - mean * scale            # (rw_steps,)
    w_fold = scale[:, None] * w                        # (rw_steps, pe_dim)
    b_fold = b.reshape(1, -1) + (shift @ w)[None, :]   # (1, pe_dim)

    wx_pad, bx_row = _x_weights(x_dim, x_cols, out_feat, wx, bx)
    w_pad = _pad_cols(w_fold, out_feat, x_cols)
    b_cat = jnp.concatenate([bx_row, b_fold.astype(jnp.float32)], axis=-1)

    tn = _choose_tile(n, tile_n)
    cost = pl.CostEstimate(
        flops=int(2 * n * out_feat * (x_dim + k)),
        transcendentals=0,
        bytes_accessed=int(4 * n * (x_dim + k + out_feat)))

    return pl.pallas_call(
        _rwse_kernel,
        grid=(pl.cdiv(n, tn),),
        out_shape=jax.ShapeDtypeStruct((n, out_feat), x.dtype),
        in_specs=[
            _node_spec(tn, x_dim),
            _node_spec(tn, k),
            _param_spec(wx_pad.shape),
            _param_spec(w_pad.shape),
            _param_spec(b_cat.shape),
        ],
        out_specs=_node_spec(tn, out_feat),
        compiler_params=pltpu.CompilerParams(
            dimension_semantics=("parallel",),
            vmem_limit_bytes=_VMEM_LIMIT),
        cost_estimate=cost,
    )(x, rw_pe, wx_pad, w_pad, b_cat)


# -----------------------------------------------------------------------------
# Parameter init (PyTorch nn.Linear default: U(-1/sqrt(fan_in), 1/sqrt(fan_in)))
# -----------------------------------------------------------------------------
def _linear_params(key, in_dim, out_dim):
    kw, kb = jax.random.split(key)
    bound = 1.0 / jnp.sqrt(in_dim)
    # stored transposed: (in_dim, out_dim) so the kernel does x @ W
    w = jax.random.uniform(kw, (in_dim, out_dim), jnp.float32, -bound, bound)
    b = jax.random.uniform(kb, (1, out_dim), jnp.float32, -bound, bound)
    return w, b


# -----------------------------------------------------------------------------
# Encoder modules (JAX side), mirroring the PyTorch module structure
# -----------------------------------------------------------------------------
class LaplacianEigenvectorEncoder:
    def __init__(self, k, pe_embed_dim, x_dim, embed_dim, key,
                 attr_name="lape_pe", expand_x=False):
        self.attr_name = attr_name
        self.expand_x = expand_x
        k1, k2, k3 = jax.random.split(key, 3)
        self.w1, self.b1 = _linear_params(k1, k, pe_embed_dim)
        self.w2, self.b2 = _linear_params(k2, pe_embed_dim, pe_embed_dim)
        self.wx = self.bx = None
        if expand_x and embed_dim - pe_embed_dim > 0:
            self.wx, self.bx = _linear_params(k3, x_dim, embed_dim - pe_embed_dim)
        elif expand_x:
            raise ValueError("embed_dim - k should be greater than 0 if expand_x is True")

    def __call__(self, batch):
        batch["x"] = lape_forward(batch["x"], batch[self.attr_name],
                                  self.w1, self.b1, self.w2, self.b2,
                                  wx=self.wx, bx=self.bx)
        return batch


class RandomWalkEncoder:
    def __init__(self, rw_steps, pe_embed_dim, x_dim, embed_dim, key,
                 attr_name="rw_pe", expand_x=False):
        self.attr_name = attr_name
        self.expand_x = expand_x
        k1, k2 = jax.random.split(key)
        # BatchNorm1d affine params
        self.gamma = jnp.ones((1, rw_steps), jnp.float32)
        self.beta = jnp.zeros((1, rw_steps), jnp.float32)
        self.w, self.b = _linear_params(k1, rw_steps, pe_embed_dim)
        self.wx = self.bx = None
        if expand_x and embed_dim - pe_embed_dim > 0:
            self.wx, self.bx = _linear_params(k2, x_dim, embed_dim - pe_embed_dim)
        elif expand_x:
            raise ValueError("embed_dim - pe_embed_dim should be greater than 0 if expand_x is True")

    def __call__(self, batch):
        batch["x"] = rwse_forward(batch["x"], batch[self.attr_name],
                                  self.gamma, self.beta, self.w, self.b,
                                  wx=self.wx, bx=self.bx)
        return batch


class ComposeNodeEncoders:
    def __init__(self, encoder_names, encoder_kwargs, key):
        if len(encoder_names) > 2:
            raise ValueError("only two encoders are supported, one for atom and one "
                             "for positional encoding")
        elif len(encoder_names) == 2 and (
                "atom" not in encoder_names
                or (encoder_names[0] == "atom" and encoder_names[1] == "atom")):
            raise ValueError("can only use two encoders if one of them is atom encoder, "
                             "and the other is positional encoder")
        self.encoders = []
        self.encoder_types = list(encoder_names)
        x_dim = encoder_kwargs["in_dim"]
        for i, name in enumerate(encoder_names):
            sub_key = jax.random.fold_in(key, i)
            if name == "atom":
                # TODO(synk): AtomEncoder (OGB categorical embedding tables) is not part
                # of the provided reference; only 'rwse'/'lape' paths are implemented.
                raise NotImplementedError("AtomEncoder not available in this synthetic kernel")
            elif name == "rwse":
                self.encoders.append(RandomWalkEncoder(
                    encoder_kwargs["rw_steps"], encoder_kwargs["pe_embed_dim"],
                    x_dim, encoder_kwargs["embed_dim"], sub_key))
            elif name == "lape":
                self.encoders.append(LaplacianEigenvectorEncoder(
                    encoder_kwargs["lape_k"], encoder_kwargs["pe_embed_dim"],
                    x_dim, encoder_kwargs["embed_dim"], sub_key))
            else:
                raise NotImplementedError("encoders available are [atom|rwse|lape]")

    def __call__(self, batch):
        for i, encoder in enumerate(self.encoders):
            if self.encoder_types[i] == "atom":
                batch["x"] = encoder(batch["x"])
            else:
                batch = encoder(batch)
        return batch


# -----------------------------------------------------------------------------
# Pure-JAX references (for sanity checking the kernels)
# -----------------------------------------------------------------------------
def _lape_ref(x, pe, w1, b1, w2, b2, wx=None, bx=None):
    xp = x if wx is None else x @ wx + bx
    h = jnp.maximum(pe @ w1 + b1, 0.0)
    return jnp.concatenate([xp, h @ w2 + b2], axis=-1)


def _rwse_ref(x, pe, gamma, beta, w, b, wx=None, bx=None, eps=1e-5):
    xp = x if wx is None else x @ wx + bx
    mean = jnp.mean(pe, axis=0, keepdims=True)
    var = jnp.mean((pe - mean) ** 2, axis=0, keepdims=True)
    pe_n = (pe - mean) / jnp.sqrt(var + eps) * gamma + beta
    return jnp.concatenate([xp, pe_n @ w + b], axis=-1)


# -----------------------------------------------------------------------------
# Main
# -----------------------------------------------------------------------------
if __name__ == "__main__":
    N, x_dim = 16, 4
    rw_steps, lape_k = 8, 8
    pe_embed_dim, embed_dim = 16, 32

    encoder_kwargs = dict(in_dim=x_dim, embed_dim=embed_dim,
                          pe_embed_dim=pe_embed_dim,
                          rw_steps=rw_steps, lape_k=lape_k)

    key = jax.random.PRNGKey(0)
    k_data, k_params = jax.random.split(key)
    kx, krw, klape = jax.random.split(k_data, 3)
    batch = {
        "x": jax.random.normal(kx, (N, x_dim), jnp.float32),
        "rw_pe": jax.random.normal(krw, (N, rw_steps), jnp.float32),
        "lape_pe": jax.random.normal(klape, (N, lape_k), jnp.float32),
    }

    # --- compose with RWSE positional encoder (single-tile path) ---
    model_rwse = ComposeNodeEncoders(["rwse"], encoder_kwargs,
                                     jax.random.fold_in(k_params, 0))
    out_rwse = model_rwse(dict(batch))
    jax.block_until_ready(out_rwse["x"])
    enc = model_rwse.encoders[0]
    ref = _rwse_ref(batch["x"], batch["rw_pe"], enc.gamma, enc.beta, enc.w, enc.b)
    assert out_rwse["x"].shape == (N, x_dim + pe_embed_dim)
    assert jnp.allclose(out_rwse["x"], ref, atol=1e-4, rtol=1e-4)

    # --- compose with LapE positional encoder (single-tile path) ---
    model_lape = ComposeNodeEncoders(["lape"], encoder_kwargs,
                                     jax.random.fold_in(k_params, 1))
    out_lape = model_lape(dict(batch))
    jax.block_until_ready(out_lape["x"])
    enc = model_lape.encoders[0]
    ref = _lape_ref(batch["x"], batch["lape_pe"], enc.w1, enc.b1, enc.w2, enc.b2)
    assert out_lape["x"].shape == (N, x_dim + pe_embed_dim)
    assert jnp.allclose(out_lape["x"], ref, atol=1e-4, rtol=1e-4)

    # --- multi-tile grid path (N not a multiple of the tile) ---
    N2 = 300
    k2x, k2rw, k2lp = jax.random.split(jax.random.fold_in(k_data, 7), 3)
    x2 = jax.random.normal(k2x, (N2, x_dim), jnp.float32)
    rw2 = jax.random.normal(k2rw, (N2, rw_steps), jnp.float32)
    lp2 = jax.random.normal(k2lp, (N2, lape_k), jnp.float32)

    enc_r = model_rwse.encoders[0]
    out_r = rwse_forward(x2, rw2, enc_r.gamma, enc_r.beta, enc_r.w, enc_r.b,
                         tile_n=128)
    jax.block_until_ready(out_r)
    ref_r = _rwse_ref(x2, rw2, enc_r.gamma, enc_r.beta, enc_r.w, enc_r.b)
    assert jnp.allclose(out_r, ref_r, atol=1e-4, rtol=1e-4)

    enc_l = model_lape.encoders[0]
    out_l = lape_forward(x2, lp2, enc_l.w1, enc_l.b1, enc_l.w2, enc_l.b2,
                         tile_n=128)
    jax.block_until_ready(out_l)
    ref_l = _lape_ref(x2, lp2, enc_l.w1, enc_l.b1, enc_l.w2, enc_l.b2)
    assert jnp.allclose(out_l, ref_l, atol=1e-4, rtol=1e-4)

    # --- expand_x path (linear_x projection of x fused into the kernel) ---
    exp_enc = LaplacianEigenvectorEncoder(lape_k, pe_embed_dim, x_dim, embed_dim,
                                          jax.random.fold_in(k_params, 2),
                                          expand_x=True)
    out_e = lape_forward(batch["x"], batch["lape_pe"], exp_enc.w1, exp_enc.b1,
                         exp_enc.w2, exp_enc.b2, wx=exp_enc.wx, bx=exp_enc.bx)
    jax.block_until_ready(out_e)
    ref_e = _lape_ref(batch["x"], batch["lape_pe"], exp_enc.w1, exp_enc.b1,
                      exp_enc.w2, exp_enc.b2, wx=exp_enc.wx, bx=exp_enc.bx)
    assert out_e.shape == (N, embed_dim)
    assert jnp.allclose(out_e, ref_e, atol=1e-4, rtol=1e-4)

    print("KERNEL_OK")
</pallas_src>

<mosaic_0001>
module attributes {stable_mosaic.version = 11 : i64} {
  func.func @_rwse_kernel(%arg0: i32, %arg1: memref<16x4xf32, #tpu.memory_space<vmem>>, %arg2: memref<16x8xf32, #tpu.memory_space<vmem>>, %arg3: memref<4x20xf32, #tpu.memory_space<vmem>>, %arg4: memref<8x20xf32, #tpu.memory_space<vmem>>, %arg5: memref<1x20xf32, #tpu.memory_space<vmem>>, %arg6: memref<16x20xf32, #tpu.memory_space<vmem>>) attributes {dimension_semantics = [#tpu.dimension_semantics<parallel>], iteration_bounds = array<i64: 1>, scalar_prefetch = 0 : i64, scratch_operands = 0 : i64, tpu.core_type = #tpu.core_type<tc>, window_params = [{transform_indices = @transform_0, window_bounds = array<i64: 16, 4>}, {transform_indices = @transform_1, window_bounds = array<i64: 16, 8>}, {pipeline_mode = #tpu.pipeline_mode<synchronous>, transform_indices = @transform_2, window_bounds = array<i64: 4, 20>}, {pipeline_mode = #tpu.pipeline_mode<synchronous>, transform_indices = @transform_3, window_bounds = array<i64: 8, 20>}, {pipeline_mode = #tpu.pipeline_mode<synchronous>, transform_indices = @transform_4, window_bounds = array<i64: 1, 20>}, {transform_indices = @transform_5, window_bounds = array<i64: 16, 20>}]} {
    %c0 = arith.constant 0 : index
    %c0_0 = arith.constant 0 : index
    %0 = vector.load %arg1[%c0, %c0_0] : memref<16x4xf32, #tpu.memory_space<vmem>>, vector<16x4xf32>
    %c0_1 = arith.constant 0 : index
    %c0_2 = arith.constant 0 : index
    %1 = vector.load %arg3[%c0_1, %c0_2] : memref<4x20xf32, #tpu.memory_space<vmem>>, vector<4x20xf32>
    %cst = arith.constant dense<0.000000e+00> : vector<16x20xf32>
    %2 = tpu.matmul %0, %1, %cst {dimension_numbers = #tpu.dot_dimension_numbers<[1], [0], [0], [1], [0, 0, 1, 1], [], []>} : vector<16x4xf32>, vector<4x20xf32>, vector<16x20xf32> -> vector<16x20xf32>
    %c0_3 = arith.constant 0 : index
    %c0_4 = arith.constant 0 : index
    %3 = vector.load %arg2[%c0_3, %c0_4] : memref<16x8xf32, #tpu.memory_space<vmem>>, vector<16x8xf32>
    %c0_5 = arith.constant 0 : index
    %c0_6 = arith.constant 0 : index
    %4 = vector.load %arg4[%c0_5, %c0_6] : memref<8x20xf32, #tpu.memory_space<vmem>>, vector<8x20xf32>
    %cst_7 = arith.constant dense<0.000000e+00> : vector<16x20xf32>
    %5 = tpu.matmul %3, %4, %cst_7 {dimension_numbers = #tpu.dot_dimension_numbers<[1], [0], [0], [1], [0, 0, 1, 1], [], []>} : vector<16x8xf32>, vector<8x20xf32>, vector<16x20xf32> -> vector<16x20xf32>
    %6 = arith.addf %2, %5 : vector<16x20xf32>
    %c0_8 = arith.constant 0 : index
    %c0_9 = arith.constant 0 : index
    %7 = vector.load %arg5[%c0_8, %c0_9] : memref<1x20xf32, #tpu.memory_space<vmem>>, vector<1x20xf32>
    %8 = vector.broadcast %7 : vector<1x20xf32> to vector<16x20xf32>
    %9 = arith.addf %6, %8 : vector<16x20xf32>
    %c0_10 = arith.constant 0 : index
    %c0_11 = arith.constant 0 : index
    %10 = vector.load %arg6[%c0_10, %c0_11] : memref<16x20xf32, #tpu.memory_space<vmem>>, vector<16x20xf32>
    tpu.vector_store %arg6[%c0_10, %c0_11], %9 {strides = array<i32>} : memref<16x20xf32, #tpu.memory_space<vmem>>, vector<16x20xf32>,
    return
  }
  func.func @transform_0(%arg0: i32) -> (i32, i32) {
    %c0_i32 = arith.constant 0 : i32
    %c0_i32_0 = arith.constant 0 : i32
    return %arg0, %c0_i32 : i32, i32
  }
  func.func @transform_1(%arg0: i32) -> (i32, i32) {
    %c0_i32 = arith.constant 0 : i32
    %c0_i32_0 = arith.constant 0 : i32
    return %arg0, %c0_i32 : i32, i32
  }
  func.func @transform_2(%arg0: i32) -> (i32, i32) {
    %c0_i32 = arith.constant 0 : i32
    %c0_i32_0 = arith.constant 0 : i32
    %c0_i32_1 = arith.constant 0 : i32
    return %c0_i32, %c0_i32_0 : i32, i32
  }
  func.func @transform_3(%arg0: i32) -> (i32, i32) {
    %c0_i32 = arith.constant 0 : i32
    %c0_i32_0 = arith.constant 0 : i32
    %c0_i32_1 = arith.constant 0 : i32
    return %c0_i32, %c0_i32_0 : i32, i32
  }
  func.func @transform_4(%arg0: i32) -> (i32, i32) {
    %c0_i32 = arith.constant 0 : i32
    %c0_i32_0 = arith.constant 0 : i32
    %c0_i32_1 = arith.constant 0 : i32
    return %c0_i32, %c0_i32_0 : i32, i32
  }
  func.func @transform_5(%arg0: i32) -> (i32, i32) {
    %c0_i32 = arith.constant 0 : i32
    %c0_i32_0 = arith.constant 0 : i32
    return %arg0, %c0_i32 : i32, i32
  }
}

</mosaic_0001>

<bundles_post_ra>
// kernel: rwse_forward.1
= control target key start
LH: loop header
LB: loop body
LE: loop exit
PB: predicated region body
PF: predicated region fallthrough
CT: control target
= control target key end

     0   :  { %vm116_vm0 = vcmask 1043456   ;;  %vm27_vm1 = vcmask 64512   ;;  %vm109_vm2 = vcmask 31744   ;;  %s327_s0 = inlined_call_operand.vmem [shape: f32[16,4], index: 0, kind: input, shape index: {}]   ;;  %s328_s1 = inlined_call_operand.vmem [shape: f32[16,8], index: 1, kind: input, shape index: {}]   ;;  %s329_s2 = inlined_call_operand.vmem [shape: f32[4,20], index: 2, kind: input, shape index: {}]   ;;  %s330_s3 = inlined_call_operand.vmem [shape: f32[8,20], index: 3, kind: input, shape index: {}]   ;;  %s331_s4 = inlined_call_operand.vmem [shape: f32[1,20], index: 4, kind: input, shape index: {}]   ;;  %s332_s5 = inlined_call_operand.hbm [shape: f32[16,20], index: 5, kind: output, shape index: {}]  }
   0x1   :  { %v26_v0 = vld [vmem:[%s330_s3] sm:$0xff]  ;;  %v25_v4 = vld [vmem:[%s328_s1 + $0x8] sm:$0xff] }
   0x2   :  { %v23_v1 = vld [vmem:[%s329_s2] sm:$0xf]  ;;  %235 = vmatprep.subr.mxu0 %v26_v0  ;;  %v22_v5 = vld [vmem:[%s327_s0 + $0x8] sm:$0xff] }
   0x3   :  { %v24_v2 = vld [vmem:[%s328_s1] sm:$0xff]  ;;  %240 = vmatprep.subr.msk.mxu1 %vm116_vm0, %v23_v1  ;;  %236 = vmatpush3.msra.mxu0 %v26_v0 }
   0x4   :  { %v21_v3 = vld [vmem:[%s327_s0] sm:$0xff]  ;;  %237 = vmatprep.mubr.msk.f32.mxu0 %vm27_vm1, %v24_v2 }
   0x5   :  { %10 = vsyncpa [#allocation3], 0  ;;  %241 = vmatpush3.msk.msra.mxu1 %vm116_vm0, %v23_v1  ;;  %242 = vmatprep.mubr.msk.f32.mxu1 %vm109_vm2, %v21_v3  ;;  %v228_v8 = vld [vmem:[%s331_s4] ss:$0 sm:$0xff]  ;;  %s270_s30 = smov [#allocation2]   ;;  %vm204_vm3 = vcmask 162816  }
   0x6   :  { %238 = vmatmul.mubr.msk.f32.vlgmr.msra.gmra.mxu0 %vm27_vm1, %v25_v4  ;;  %243 = vmatmul.mubr.msk.f32.vlgmr.msra.gmra.mxu1 %vm109_vm2, %v22_v5  ;;  %s212_s1 = sshll.u32 %s270_s30, 4  ;;  %s213_s1 = int_to_ptr.vmem [resolvable:$true] %s212_s1 }
   0x7   :  { %s248_s0 = scalar_lea.vmem %s213_s1, 256  ;;  %p253_p1 = scmp.lt.s32.totalorder %s213_s1, %s213_s1 }
   0x8   :  { %p249_p0 = scmp.ne.s32.totalorder %s213_s1, %s248_s0  ;;  %p254_p2 = scmp.lt.s32.totalorder %s248_s0, %s248_s0 }
   0xa   :  { %p255_p3 = por %p254_p2, %p253_p1 }
   0xc   :  { %p256_p4 = pnand %p255_p3, %p249_p0 }
  0xc6   :  { %v239_v6 = vpop.f32.mrf.mxu0  ;;  %v244_v7 = vpop.f32.mrf.mxu1 }
  0xc7   :  { %v192_v9 = vadd.f32 %v244_v7, %v239_v6 }
  0xc8   :  { %v100_v10 = vpop.f32.mrf.mxu0  ;;  %v186_v11 = vpop.f32.mrf.mxu1 }
  0xc9   :  { %v203_v12 = vadd.f32 %v228_v8, %v192_v9  ;;  %v187_v13 = vadd.f32 %v186_v11, %v100_v10 }
  0xcb   :  { %206 = vst.msk [vmem:[#allocation2 + $0x8] sm:$0xff] %vm204_vm3, %v203_v12  ;;  %v202_v14 = vadd.f32 %v228_v8, %v187_v13 }
  0xcd   :  { %205 = vst.msk [vmem:[#allocation2] sm:$0xff] %vm204_vm3, %v202_v14 }
  0xce   :  { %259 = shalt.err (!%p256_p4)
}
  0xcf   :  { %s271_s4 = smov 128   ;;  %s272_s6 = smov 8  }
  0xd0   :  { %218 = dma.vmem_to_hbm [thread:$0]  %s213_s1, 256, %s332_s5, [#allocation3], %s271_s4, %s271_s4, %s272_s6  }
  0xd1   :  { %268 = dma.done.wait [#allocation3], 256  }
  0xd2   :  { %269 = vsyncadd [#allocation3], 4294967040 }
  0xd3   :  { %222 = vsyncpa [#allocation3], 1 }

</bundles_post_ra>
